<compile_context>
chip_gen: v6e
topology: v6e:2x2x1
jax: 0.10.0
libtpu: 0.0.40
codegen_flags: <defaults>
</compile_context>

<pallas_src>
import jax
import jax.numpy as jnp
from jax import lax
from jax.experimental import pallas as pl
from jax.experimental.pallas import tpu as pltpu


IDX_TILE = 128                 # indices gathered per grid step (multiple of 8, lane-sized)
ONE_HOT_MAX_ROWS = 4096        # one-hot MXU gather only for small vocabularies
VMEM_LIMIT_CAP = 48 * 1024 * 1024   # safe on v5e/v6e (128 MiB) and v7x (64 MiB) VMEM


# ----------------------------------------------------------------------------
# Primary path: resident table + one-hot MXU gather, IDX_TILE rows per step.
# ----------------------------------------------------------------------------
def _onehot_gather_kernel(idx_ref, table_ref, out_ref):
    # idx_ref:   (IDX_TILE, 1) int32 block of clamped row ids.
    # table_ref: (num_rows, dim) full embedding table; constant index_map keeps
    #            it resident in VMEM (DMA'd once, reused every grid step).
    # out_ref:   (IDX_TILE, dim) gathered rows (sublane/lane aligned).
    idx = idx_ref[...]                                            # (T, 1) int32
    num_rows = table_ref.shape[0]
    row_ids = lax.broadcasted_iota(jnp.int32, (idx.shape[0], num_rows), 1)
    one_hot = (row_ids == idx).astype(table_ref.dtype)            # exact 0/1 selector
    out_ref[...] = jnp.dot(
        one_hot, table_ref[...], preferred_element_type=jnp.float32
    ).astype(out_ref.dtype)


def _resident_onehot_gather(table: jax.Array, flat_idx: jax.Array) -> jax.Array:
    """flat_idx: (n,) int32 (already clamped). Returns (n, dim)."""
    num_rows, dim = table.shape
    n = flat_idx.shape[0]
    n_pad = ((n + IDX_TILE - 1) // IDX_TILE) * IDX_TILE
    idx2d = jnp.pad(flat_idx, (0, n_pad - n)).reshape(n_pad, 1)

    itemsize = table.dtype.itemsize
    table_bytes = num_rows * dim * itemsize
    out_tile_bytes = IDX_TILE * dim * itemsize
    onehot_bytes = IDX_TILE * num_rows * 4
    vmem_needed = 2 * table_bytes + 2 * out_tile_bytes + 2 * IDX_TILE * 4 \
        + onehot_bytes + (4 << 20)
    vmem_limit = int(min(max(vmem_needed, 32 << 20), VMEM_LIMIT_CAP))

    cost = pl.CostEstimate(
        flops=2 * n_pad * num_rows * dim,
        transcendentals=0,
        bytes_accessed=table_bytes + n_pad * dim * itemsize + n_pad * 4,
    )

    out = pl.pallas_call(
        _onehot_gather_kernel,
        grid_spec=pltpu.PrefetchScalarGridSpec(
            num_scalar_prefetch=0,
            grid=(n_pad // IDX_TILE,),
            in_specs=[
                pl.BlockSpec((IDX_TILE, 1), lambda i: (i, 0)),
                # Whole table, constant block index -> DMA'd once, stays resident.
                pl.BlockSpec((num_rows, dim), lambda i: (0, 0)),
            ],
            out_specs=pl.BlockSpec((IDX_TILE, dim), lambda i: (i, 0)),
        ),
        out_shape=jax.ShapeDtypeStruct((n_pad, dim), table.dtype),
        compiler_params=pltpu.CompilerParams(
            dimension_semantics=("parallel",),
            vmem_limit_bytes=vmem_limit,
        ),
        cost_estimate=cost,
    )(idx2d, table)

    return out[:n]


# ----------------------------------------------------------------------------
# Fallback path (large vocabularies): per-row scalar-prefetch BlockSpec gather.
# ----------------------------------------------------------------------------
def _gather_row_kernel(idx_ref, table_row_ref, out_ref):
    # Data-dependent row selection happens in the BlockSpec index_map; the body
    # just moves the selected row to the output block.
    out_ref[...] = table_row_ref[...]


def _rowwise_gather(table: jax.Array, flat_idx: jax.Array) -> jax.Array:
    """flat_idx: (n,) int32 (already clamped). Returns (n, dim)."""
    num_rows, dim = table.shape
    n = flat_idx.shape[0]
    itemsize = table.dtype.itemsize

    cost = pl.CostEstimate(
        flops=0,
        transcendentals=0,
        bytes_accessed=2 * n * dim * itemsize + n * 4,
    )

    grid_spec = pltpu.PrefetchScalarGridSpec(
        num_scalar_prefetch=1,           # flat_idx -> SMEM before the grid runs
        grid=(n,),
        in_specs=[
            # Grid step i fetches table row flat_idx[i] (block (1, dim)).
            pl.BlockSpec((1, dim), lambda i, idx: (idx[i], 0)),
        ],
        out_specs=pl.BlockSpec((1, dim), lambda i, idx: (i, 0)),
    )

    return pl.pallas_call(
        _gather_row_kernel,
        grid_spec=grid_spec,
        out_shape=jax.ShapeDtypeStruct((n, dim), table.dtype),
        compiler_params=pltpu.CompilerParams(
            dimension_semantics=("arbitrary",),
        ),
        cost_estimate=cost,
    )(flat_idx, table)


# ----------------------------------------------------------------------------
# Public wrapper: GroupEmbeddingLayer.forward
# ----------------------------------------------------------------------------
def group_embedding_forward(table: jax.Array, num_group: jax.Array) -> jax.Array:
    """Pallas implementation of nn.Embedding lookup.

    table:      [number_group, embedding_dim] float
    num_group:  integer array of any shape (group ids)
    returns:    num_group.shape + (embedding_dim,)
    """
    num_rows, dim = table.shape
    flat_idx = jnp.clip(num_group.reshape(-1).astype(jnp.int32), 0, num_rows - 1)

    itemsize = table.dtype.itemsize
    table_bytes = num_rows * dim * itemsize
    onehot_bytes = IDX_TILE * num_rows * 4
    fits_vmem = (2 * table_bytes + onehot_bytes + (8 << 20)) <= VMEM_LIMIT_CAP

    if num_rows <= ONE_HOT_MAX_ROWS and fits_vmem:
        out = _resident_onehot_gather(table, flat_idx)
    else:
        out = _rowwise_gather(table, flat_idx)

    return out.reshape(num_group.shape + (dim,))


if __name__ == "__main__":
    number_group = 64
    embedding_dim = 128

    key = jax.random.PRNGKey(0)
    k_table, k_idx = jax.random.split(key)

    # nn.Embedding default init: weights ~ N(0, 1)
    table = jax.random.normal(
        k_table, (number_group, embedding_dim), dtype=jnp.float32)
    num_group = jax.random.randint(
        k_idx, (2, 4), 0, number_group, dtype=jnp.int32)

    # Primary (resident one-hot MXU) path.
    group_embeds = group_embedding_forward(table, num_group)
    group_embeds = jax.block_until_ready(group_embeds)

    ref = table[num_group]
    assert group_embeds.shape == (2, 4, embedding_dim)
    assert jnp.allclose(group_embeds, ref), "mismatch vs reference gather (primary path)"

    # Also exercise the large-table fallback path on the same data.
    flat = jnp.clip(num_group.reshape(-1).astype(jnp.int32), 0, number_group - 1)
    fb = _rowwise_gather(table, flat)
    fb = jax.block_until_ready(fb)
    assert jnp.allclose(fb.reshape(num_group.shape + (embedding_dim,)), ref), \
        "mismatch vs reference gather (fallback path)"

    print("KERNEL_OK")
</pallas_src>

<mosaic_0001>
module attributes {stable_mosaic.version = 11 : i64} {
  func.func @_onehot_gather_kernel(%arg0: i32, %arg1: memref<128x1xi32, #tpu.memory_space<vmem>>, %arg2: memref<64x128xf32, #tpu.memory_space<vmem>>, %arg3: memref<128x128xf32, #tpu.memory_space<vmem>>) attributes {dimension_semantics = [#tpu.dimension_semantics<parallel>], iteration_bounds = array<i64: 1>, scalar_prefetch = 0 : i64, scratch_operands = 0 : i64, tpu.core_type = #tpu.core_type<tc>, window_params = [{transform_indices = @transform_0, window_bounds = array<i64: 128, 1>}, {pipeline_mode = #tpu.pipeline_mode<synchronous>, transform_indices = @transform_1, window_bounds = array<i64: 64, 128>}, {transform_indices = @transform_2, window_bounds = array<i64: 128, 128>}]} {
    %c0 = arith.constant 0 : index
    %c0_0 = arith.constant 0 : index
    %0 = vector.load %arg1[%c0, %c0_0] : memref<128x1xi32, #tpu.memory_space<vmem>>, vector<128x1xi32>
    %1 = tpu.iota {dimensions = array<i32: 1>} : vector<128x64xi32>
    %2 = vector.broadcast %0 : vector<128x1xi32> to vector<128x64xi32>
    %3 = arith.cmpi eq, %1, %2 : vector<128x64xi32>
    %4 = arith.extui %3 : vector<128x64xi1> to vector<128x64xi32>
    %5 = arith.sitofp %4 : vector<128x64xi32> to vector<128x64xf32>
    %c0_1 = arith.constant 0 : index
    %c0_2 = arith.constant 0 : index
    %6 = vector.load %arg2[%c0_1, %c0_2] : memref<64x128xf32, #tpu.memory_space<vmem>>, vector<64x128xf32>
    %cst = arith.constant dense<0.000000e+00> : vector<128x128xf32>
    %7 = tpu.matmul %5, %6, %cst {dimension_numbers = #tpu.dot_dimension_numbers<[1], [0], [0], [1], [0, 0, 1, 1], [], []>} : vector<128x64xf32>, vector<64x128xf32>, vector<128x128xf32> -> vector<128x128xf32>
    %c0_3 = arith.constant 0 : index
    %c0_4 = arith.constant 0 : index
    %8 = vector.load %arg3[%c0_3, %c0_4] : memref<128x128xf32, #tpu.memory_space<vmem>>, vector<128x128xf32>
    tpu.vector_store %arg3[%c0_3, %c0_4], %7 {strides = array<i32>} : memref<128x128xf32, #tpu.memory_space<vmem>>, vector<128x128xf32>,
    return
  }
  func.func @transform_0(%arg0: i32) -> (i32, i32) {
    %c0_i32 = arith.constant 0 : i32
    %c0_i32_0 = arith.constant 0 : i32
    return %arg0, %c0_i32 : i32, i32
  }
  func.func @transform_1(%arg0: i32) -> (i32, i32) {
    %c0_i32 = arith.constant 0 : i32
    %c0_i32_0 = arith.constant 0 : i32
    %c0_i32_1 = arith.constant 0 : i32
    return %c0_i32, %c0_i32_0 : i32, i32
  }
  func.func @transform_2(%arg0: i32) -> (i32, i32) {
    %c0_i32 = arith.constant 0 : i32
    %c0_i32_0 = arith.constant 0 : i32
    return %arg0, %c0_i32 : i32, i32
  }
}

</mosaic_0001>

<bundles_post_ra>
// kernel: tpu_custom_call.1
= control target key start
LH: loop header
LB: loop body
LE: loop exit
PB: predicated region body
PF: predicated region fallthrough
CT: control target
= control target key end

     0   :  { %v501_v2 = vmov 0   ;;  %s630_s0 = inlined_call_operand.vmem [shape: s32[128,1], index: 0, kind: input, shape index: {}]   ;;  %s631_s1 = inlined_call_operand.vmem [shape: f32[64,128], index: 1, kind: input, shape index: {}]   ;;  %s632_s2 = inlined_call_operand.hbm [shape: f32[128,128], index: 2, kind: output, shape index: {}]  }
   0x1   :  { %v13_v0 = vld [vmem:[%s630_s0 + $0x8] sm:$0xff]  ;;  %v12_v1 = vld [vmem:[%s630_s0] sm:$0xff]  ;;  %478 = vset.pattern.permute.xlu1 %v501_v2  ;;  %477 = vset.pattern.permute.xlu0 %v501_v2  ;;  %v133_v5 = vld [vmem:[%s631_s1 + $0x38] sm:$0xff] }
   0x2   :  { %34 = vperm.xlu1 %478, %v13_v0   ;;  %31 = vperm.xlu0 %477, %v12_v1   ;;  %v21_v3 = vld [vmem:[%s630_s0 + $0x48] sm:$0xff]  ;;  %v20_v4 = vld [vmem:[%s630_s0 + $0x40] sm:$0xff]  ;;  %v132_v6 = vld [vmem:[%s631_s1 + $0x30] sm:$0xff] }
   0x3   :  { %v22_v7 = vld [vmem:[%s630_s0 + $0x50] sm:$0xff]  ;;  %416 = vmatprep.subr.mxu0 %v133_v5  ;;  %456 = vmatprep.subr.mxu1 %v133_v5 }
   0x4   :  { %v14_v8 = vld [vmem:[%s630_s0 + $0x10] sm:$0xff]  ;;  %417 = vmatpush3.msra.mxu0 %v133_v5  ;;  %464 = vmatpush3.msra.mxu1 %v133_v5 }
   0x6   :  { %58 = vperm.xlu1 %478, %v21_v3   ;;  %55 = vperm.xlu0 %477, %v20_v4  }
   0x7   :  { %7 = vsyncpa [#allocation3], 0  ;;  %418 = vmatprep.subr.mxu0 %v132_v6  ;;  %v131_v9 = vld [vmem:[%s631_s1 + $0x28] sm:$0xff]  ;;  %457 = vmatprep.subr.mxu1 %v132_v6  ;;  %v23_v10 = vld [vmem:[%s630_s0 + $0x58] sm:$0xff]  ;;  %v28_v25 = vlaneseq  ;;  %vm134_vm0 = vcmask 523264   ;;  %v502_v29 = vmov 0.0  }
   0x8   :  { %v15_v11 = vld [vmem:[%s630_s0 + $0x18] sm:$0xff]  ;;  %419 = vmatpush3.msra.mxu0 %v132_v6  ;;  %465 = vmatpush3.msra.mxu1 %v132_v6  ;;  %v130_v12 = vld [vmem:[%s631_s1 + $0x20] sm:$0xff]  ;;  %v128_v16 = vld [vmem:[%s631_s1 + $0x10] sm:$0xff] }
   0x9   :  { %420 = vmatprep.subr.mxu0 %v131_v9  ;;  %458 = vmatprep.subr.mxu1 %v131_v9  ;;  %v129_v13 = vld [vmem:[%s631_s1 + $0x18] sm:$0xff]  ;;  %v24_v14 = vld [vmem:[%s630_s0 + $0x60] sm:$0xff]  ;;  %v25_v17 = vld [vmem:[%s630_s0 + $0x68] sm:$0xff]  ;;  %v593_v26 = vand.u32 127, %v28_v25 }
   0xa   :  { %61 = vperm.xlu1 %478, %v22_v7   ;;  %37 = vperm.xlu0 %477, %v14_v8   ;;  %v16_v15 = vld [vmem:[%s630_s0 + $0x20] sm:$0xff]  ;;  %v17_v18 = vld [vmem:[%s630_s0 + $0x28] sm:$0xff]  ;;  %v26_v21 = vld [vmem:[%s630_s0 + $0x70] sm:$0xff] }
   0xb   :  { %421 = vmatpush3.msra.mxu0 %v131_v9  ;;  %466 = vmatpush3.msra.mxu1 %v131_v9  ;;  %v127_v19 = vld [vmem:[%s631_s1 + $0x8] sm:$0xff]  ;;  %v126_v20 = vld [vmem:[%s631_s1] sm:$0xff]  ;;  %v18_v22 = vld [vmem:[%s630_s0 + $0x30] sm:$0xff] }
   0xc   :  { %422 = vmatprep.subr.mxu0 %v130_v12  ;;  %459 = vmatprep.subr.mxu1 %v130_v12  ;;  %v27_v23 = vld [vmem:[%s630_s0 + $0x78] sm:$0xff] }
   0xd   :  { %423 = vmatpush3.msra.mxu0 %v130_v12  ;;  %467 = vmatpush3.msra.mxu1 %v130_v12  ;;  %v19_v24 = vld [vmem:[%s630_s0 + $0x38] sm:$0xff]  ;;  %s503_s0 = smov [#allocation2]  }
   0xe   :  { %64 = vperm.xlu1 %478, %v23_v10   ;;  %40 = vperm.xlu0 %477, %v15_v11   ;;  %s349_s28 = sshll.u32 %s503_s0, 4  ;;  %s350_s28 = int_to_ptr.vmem [resolvable:$true] %s349_s28 }
   0xf   :  { %424 = vmatprep.subr.mxu0 %v129_v13  ;;  %460 = vmatprep.subr.mxu1 %v129_v13  ;;  %s479_s29 = scalar_lea.vmem %s350_s28, 2048  ;;  %p484_p1 = scmp.lt.s32.totalorder %s350_s28, %s350_s28 }
  0x10   :  { %425 = vmatpush3.msra.mxu0 %v129_v13  ;;  %468 = vmatpush3.msra.mxu1 %v129_v13  ;;  %p480_p0 = scmp.ne.s32.totalorder %s350_s28, %s479_s29  ;;  %p485_p2 = scmp.lt.s32.totalorder %s479_s29, %s479_s29 }
  0x11   :  { %426 = vmatprep.subr.mxu0 %v128_v16  ;;  %461 = vmatprep.subr.mxu1 %v128_v16 }
  0x12   :  { %67 = vperm.xlu1 %478, %v24_v14   ;;  %43 = vperm.xlu0 %477, %v16_v15   ;;  %p486_p3 = por %p485_p2, %p484_p1 }
  0x13   :  { %427 = vmatpush3.msra.mxu0 %v128_v16  ;;  %469 = vmatpush3.msra.mxu1 %v128_v16 }
  0x14   :  { %428 = vmatprep.subr.mxu0 %v127_v19  ;;  %462 = vmatprep.subr.mxu1 %v127_v19  ;;  %p487_p4 = pnand %p486_p3, %p480_p0 }
  0x15   :  { %429 = vmatpush3.msra.mxu0 %v127_v19  ;;  %470 = vmatpush3.msra.mxu1 %v127_v19 }
  0x16   :  { %70 = vperm.xlu1 %478, %v25_v17   ;;  %46 = vperm.xlu0 %477, %v17_v18  }
  0x17   :  { %430 = vmatprep.subr.mxu0 %v126_v20  ;;  %463 = vmatprep.subr.mxu1 %v126_v20 }
  0x18   :  { %431 = vmatpush3.msra.mxu0 %v126_v20  ;;  %471 = vmatpush3.msra.mxu1 %v126_v20 }
  0x1a   :  { %73 = vperm.xlu1 %478, %v26_v21   ;;  %49 = vperm.xlu0 %477, %v18_v22  }
  0x1e   :  { %76 = vperm.xlu1 %478, %v27_v23   ;;  %52 = vperm.xlu0 %477, %v19_v24  }
  0x7d   :  { %v35_v27 = vpop.permute.xlu1 %34  ;;  %v32_v28 = vpop.permute.xlu0 %31 }
  0x7e   :  { %vm79_vm1 = vcmp.eq.s32.totalorder %v593_v26, %v35_v27  ;;  %vm78_vm2 = vcmp.eq.s32.totalorder %v593_v26, %v32_v28 }
  0x7f   :  { %v361_v30 = vsel %vm79_vm1, 1.0, %v502_v29  ;;  %v360_v31 = vsel %vm78_vm2, 1.0, %v502_v29 }
  0x80   :  { %432 = vmatprep.mubr.msk.f32.mxu0 %vm134_vm0, %v360_v31 }
  0x81   :  { %v59_v32 = vpop.permute.xlu1 %58  ;;  %433 = vmatmul.mubr.msk.f32.vlgmr.msra.gmra.mxu0 %vm134_vm0, %v361_v30  ;;  %v56_v33 = vpop.permute.xlu0 %55 }
  0x82   :  { %vm87_vm3 = vcmp.eq.s32.totalorder %v593_v26, %v59_v32  ;;  %vm86_vm4 = vcmp.eq.s32.totalorder %v593_v26, %v56_v33 }
  0x83   :  { %v369_v34 = vsel %vm87_vm3, 1.0, %v502_v29  ;;  %v368_v35 = vsel %vm86_vm4, 1.0, %v502_v29 }
  0x84   :  { %444 = vmatprep.mubr.msk.f32.mxu1 %vm134_vm0, %v368_v35 }
  0x85   :  { %v62_v36 = vpop.permute.xlu1 %61  ;;  %445 = vmatmul.mubr.msk.f32.vlgmr.msra.gmra.mxu1 %vm134_vm0, %v369_v34  ;;  %v38_v37 = vpop.permute.xlu0 %37 }
  0x86   :  { %vm88_vm5 = vcmp.eq.s32.totalorder %v593_v26, %v62_v36  ;;  %vm80_vm6 = vcmp.eq.s32.totalorder %v593_v26, %v38_v37 }
  0x87   :  { %v370_v38 = vsel %vm88_vm5, 1.0, %v502_v29  ;;  %v362_v39 = vsel %vm80_vm6, 1.0, %v502_v29 }
  0x88   :  { %435 = vmatprep.mubr.msk.f32.mxu0 %vm134_vm0, %v362_v39  ;;  %447 = vmatprep.mubr.msk.f32.mxu1 %vm134_vm0, %v370_v38 }
  0x89   :  { %v65_v40 = vpop.permute.xlu1 %64  ;;  %v41_v41 = vpop.permute.xlu0 %40 }
  0x8a   :  { %vm89_vm7 = vcmp.eq.s32.totalorder %v593_v26, %v65_v40  ;;  %vm81_vm8 = vcmp.eq.s32.totalorder %v593_v26, %v41_v41 }
  0x8b   :  { %v371_v42 = vsel %vm89_vm7, 1.0, %v502_v29  ;;  %v363_v43 = vsel %vm81_vm8, 1.0, %v502_v29 }
  0x8c   :  { %436 = vmatmul.mubr.msk.f32.gmra.mxu0 %vm134_vm0, %v363_v43  ;;  %448 = vmatmul.mubr.msk.f32.gmra.mxu1 %vm134_vm0, %v371_v42 }
  0x8d   :  { %v68_v44 = vpop.permute.xlu1 %67  ;;  %v44_v45 = vpop.permute.xlu0 %43 }
  0x8e   :  { %vm90_vm9 = vcmp.eq.s32.totalorder %v593_v26, %v68_v44  ;;  %vm82_vm10 = vcmp.eq.s32.totalorder %v593_v26, %v44_v45 }
  0x8f   :  { %v372_v46 = vsel %vm90_vm9, 1.0, %v502_v29  ;;  %v364_v47 = vsel %vm82_vm10, 1.0, %v502_v29 }
  0x90   :  { %438 = vmatprep.mubr.msk.f32.mxu0 %vm134_vm0, %v364_v47  ;;  %450 = vmatprep.mubr.msk.f32.mxu1 %vm134_vm0, %v372_v46 }
  0x91   :  { %v71_v48 = vpop.permute.xlu1 %70  ;;  %v47_v49 = vpop.permute.xlu0 %46 }
  0x92   :  { %vm91_vm11 = vcmp.eq.s32.totalorder %v593_v26, %v71_v48  ;;  %vm83_vm12 = vcmp.eq.s32.totalorder %v593_v26, %v47_v49 }
  0x93   :  { %v373_v50 = vsel %vm91_vm11, 1.0, %v502_v29  ;;  %v365_v51 = vsel %vm83_vm12, 1.0, %v502_v29 }
  0x94   :  { %439 = vmatmul.mubr.msk.f32.gmra.mxu0 %vm134_vm0, %v365_v51  ;;  %451 = vmatmul.mubr.msk.f32.gmra.mxu1 %vm134_vm0, %v373_v50 }
  0x95   :  { %v74_v52 = vpop.permute.xlu1 %73  ;;  %v50_v53 = vpop.permute.xlu0 %49 }
  0x96   :  { %vm92_vm13 = vcmp.eq.s32.totalorder %v593_v26, %v74_v52  ;;  %vm84_vm14 = vcmp.eq.s32.totalorder %v593_v26, %v50_v53 }
  0x97   :  { %v374_v54 = vsel %vm92_vm13, 1.0, %v502_v29  ;;  %v366_v55 = vsel %vm84_vm14, 1.0, %v502_v29 }
  0x98   :  { %441 = vmatprep.mubr.msk.f32.mxu0 %vm134_vm0, %v366_v55  ;;  %453 = vmatprep.mubr.msk.f32.mxu1 %vm134_vm0, %v374_v54 }
  0x99   :  { %v77_v56 = vpop.permute.xlu1 %76  ;;  %v53_v57 = vpop.permute.xlu0 %52 }
  0x9a   :  { %vm93_vm15 = vcmp.eq.s32.totalorder %v593_v26, %v77_v56  ;;  %vm85_vm1 = vcmp.eq.s32.totalorder %v593_v26, %v53_v57 }
  0x9b   :  { %v375_v58 = vsel %vm93_vm15, 1.0, %v502_v29  ;;  %v367_v59 = vsel %vm85_vm1, 1.0, %v502_v29 }
  0x9c   :  { %442 = vmatmul.mubr.msk.f32.gmra.mxu0 %vm134_vm0, %v367_v59  ;;  %454 = vmatmul.mubr.msk.f32.gmra.mxu1 %vm134_vm0, %v375_v58 }
 0x141   :  { %v434_v60 = vpop.f32.mrf.mxu0 }
 0x142   :  { %329 = vst [vmem:[#allocation2 + $0x8] sm:$0xff] %v434_v60 }
 0x143   :  { %v249_v61 = vpop.f32.mrf.mxu0 }
 0x144   :  { %328 = vst [vmem:[#allocation2] sm:$0xff] %v249_v61 }
 0x145   :  { %v446_v62 = vpop.f32.mrf.mxu1 }
 0x146   :  { %337 = vst [vmem:[#allocation2 + $0x48] sm:$0xff] %v446_v62 }
 0x147   :  { %v289_v63 = vpop.f32.mrf.mxu1 }
 0x148   :  { %336 = vst [vmem:[#allocation2 + $0x40] sm:$0xff] %v289_v63 }
 0x14c   :  { %v437_v0 = vpop.f32.mrf.mxu0  ;;  %v449_v1 = vpop.f32.mrf.mxu1 }
 0x14d   :  { %331 = vst [vmem:[#allocation2 + $0x18] sm:$0xff] %v437_v0  ;;  %339 = vst [vmem:[#allocation2 + $0x58] sm:$0xff] %v449_v1 }
 0x14e   :  { %v259_v2 = vpop.f32.mrf.mxu0  ;;  %v299_v3 = vpop.f32.mrf.mxu1 }
 0x14f   :  { %330 = vst [vmem:[#allocation2 + $0x10] sm:$0xff] %v259_v2  ;;  %338 = vst [vmem:[#allocation2 + $0x50] sm:$0xff] %v299_v3 }
 0x154   :  { %v440_v4 = vpop.f32.mrf.mxu0  ;;  %v452_v5 = vpop.f32.mrf.mxu1 }
 0x155   :  { %333 = vst [vmem:[#allocation2 + $0x28] sm:$0xff] %v440_v4  ;;  %341 = vst [vmem:[#allocation2 + $0x68] sm:$0xff] %v452_v5 }
 0x156   :  { %v269_v6 = vpop.f32.mrf.mxu0  ;;  %v309_v7 = vpop.f32.mrf.mxu1 }
 0x157   :  { %332 = vst [vmem:[#allocation2 + $0x20] sm:$0xff] %v269_v6  ;;  %340 = vst [vmem:[#allocation2 + $0x60] sm:$0xff] %v309_v7 }
 0x15c   :  { %v443_v8 = vpop.f32.mrf.mxu0  ;;  %v455_v9 = vpop.f32.mrf.mxu1 }
 0x15d   :  { %335 = vst [vmem:[#allocation2 + $0x38] sm:$0xff] %v443_v8  ;;  %343 = vst [vmem:[#allocation2 + $0x78] sm:$0xff] %v455_v9 }
 0x15e   :  { %v279_v10 = vpop.f32.mrf.mxu0  ;;  %v319_v11 = vpop.f32.mrf.mxu1 }
 0x15f   :  { %334 = vst [vmem:[#allocation2 + $0x30] sm:$0xff] %v279_v10  ;;  %342 = vst [vmem:[#allocation2 + $0x70] sm:$0xff] %v319_v11 }
 0x160   :  { %490 = shalt.err (!%p487_p4)
}
 0x161   :  { %s504_s30 = smov 128   ;;  %s505_s3 = smov 8  }
 0x162   :  { %355 = dma.vmem_to_hbm [thread:$0]  %s350_s28, 2048, %s632_s2, [#allocation3], %s504_s30, %s504_s30, %s505_s3  }
 0x163   :  { %499 = dma.done.wait [#allocation3], 2048  }
 0x164   :  { %500 = vsyncadd [#allocation3], 4294965248 }
 0x165   :  { %359 = vsyncpa [#allocation3], 1 }

</bundles_post_ra>
